<compile_context>
chip_gen: v6e
topology: v6e:2x2x1
jax: 0.10.0
libtpu: 0.0.40
codegen_flags: <defaults>
</compile_context>

<pallas_src>
import functools

import numpy as np
import jax
import jax.numpy as jnp
from jax import lax
from jax.experimental import pallas as pl
from jax.experimental.pallas import tpu as pltpu

TOPK = 3                     # global_sort_pool(k=3) in the reference module
NEG_INF = -3.0e38            # Python float -> trace-time literal, NOT a captured array


def _global_pool_kernel(batch_ref, x_ref, o_ref, *, num_graphs, k):
    """cat([segment_mean, segment_sum, sort_pool_topk(k)], -1) for all graphs."""
    x = x_ref[...]                                    # (N, F) f32, nodes on sublanes
    n, f = x.shape
    b = num_graphs

    batch_row = batch_ref[...]                        # (1, N) int32 graph id per node
    graph_id = lax.broadcasted_iota(jnp.int32, (b, n), 0)
    seg = batch_row == graph_id                       # (B, N) segment membership
    onehot = seg.astype(jnp.float32)

    # ---- global_add_pool / global_mean_pool: one MXU matmul for all graphs ----
    sums = jnp.dot(onehot, x, preferred_element_type=jnp.float32)     # (B, F)
    cnt = jnp.sum(onehot, axis=1, keepdims=True)                      # (B, 1)
    means = sums / jnp.maximum(cnt, 1.0)              # guard empty segments (no NaN)

    # ---- global_sort_pool(k): top-k nodes per graph by the LAST channel -------
    # Lay the per-node key out along lanes via one rhs-transposed dot with a
    # one-hot feature selector (avoids any sublane<->lane transpose of x).
    e_last = (lax.broadcasted_iota(jnp.int32, (1, f), 1) == f - 1).astype(jnp.float32)
    key_row = lax.dot_general(e_last, x, (((1,), (1,)), ((), ())),
                              preferred_element_type=jnp.float32)     # (1, N)
    key = jnp.where(seg, key_row, NEG_INF)                            # (B, N)
    node_id = lax.broadcasted_iota(jnp.int32, (b, n), 1).astype(jnp.float32)

    pieces = [means, sums]
    for kk in range(k):                               # static unroll, k == 3
        mx = jnp.max(key, axis=1, keepdims=True)                      # (B, 1)
        # first occurrence of the max => deterministic (stable-sort) tie-break
        idx = jnp.min(jnp.where(key >= mx, node_id, float(n)),
                      axis=1, keepdims=True)                          # (B, 1)
        valid = cnt > float(kk)                       # zero-pad graphs with < k nodes
        sel = ((node_id == idx) & valid).astype(jnp.float32)          # (B, N) one-hot
        pieces.append(jnp.dot(sel, x, preferred_element_type=jnp.float32))  # gather
        key = jnp.where(node_id == idx, NEG_INF, key)                 # drop picked node

    # lane concat of (B, F) pieces (F = 128-aligned) -> one dense (B, 5F) store
    o_ref[...] = jnp.concatenate(pieces, axis=1).astype(o_ref.dtype)


def global_pool(x, batch, num_graphs, k=TOPK):
    """Pallas GlobalPool forward.  x: (N, F) f32, batch: (N,) int graph ids."""
    n, f = x.shape
    batch_row = batch.astype(jnp.int32).reshape(1, n)
    kernel = functools.partial(_global_pool_kernel,
                               num_graphs=int(num_graphs), k=int(k))
    return pl.pallas_call(
        kernel,
        out_shape=jax.ShapeDtypeStruct((int(num_graphs), (2 + int(k)) * f),
                                       jnp.float32),
        in_specs=[pl.BlockSpec(memory_space=pltpu.MemorySpace.VMEM),
                  pl.BlockSpec(memory_space=pltpu.MemorySpace.VMEM)],
        out_specs=pl.BlockSpec(memory_space=pltpu.MemorySpace.VMEM),
    )(batch_row, x)


def _global_pool_reference(x, batch, num_graphs, k):
    """Pure numpy reference: cat([mean, sum, sort_pool(k)], -1)."""
    n, f = x.shape
    out = np.zeros((num_graphs, (2 + k) * f), np.float32)
    for g in range(num_graphs):
        rows = x[batch == g]
        if rows.shape[0] == 0:
            continue
        out[g, :f] = rows.mean(axis=0)
        out[g, f:2 * f] = rows.sum(axis=0)
        order = np.argsort(-rows[:, -1], kind="stable")[:k]
        top = rows[order]
        out[g, 2 * f:2 * f + top.shape[0] * f] = top.reshape(-1)
    return out


if __name__ == "__main__":
    NUM_NODES, FEATURES, NUM_GRAPHS = 16, 128, 2

    root = jax.random.PRNGKey(0)
    kx, kp = jax.random.split(root)
    x = jax.random.normal(kx, (NUM_NODES, FEATURES), jnp.float32)
    # well-separated sort keys in the last channel so top-k selection is
    # insensitive to matmul rounding when compared against the numpy reference
    sort_key = jax.random.permutation(
        kp, jnp.linspace(-2.0, 2.0, NUM_NODES, dtype=jnp.float32))
    x = x.at[:, -1].set(sort_key)
    batch = jnp.array([0] * 7 + [1] * 9, dtype=jnp.int32)     # two graphs

    out = jax.block_until_ready(global_pool(x, batch, NUM_GRAPHS))

    assert out.shape == (NUM_GRAPHS, (2 + TOPK) * FEATURES), out.shape
    out_np = np.asarray(out)
    assert np.all(np.isfinite(out_np))
    ref = _global_pool_reference(np.asarray(x), np.asarray(batch), NUM_GRAPHS, TOPK)
    assert np.allclose(out_np, ref, rtol=5e-2, atol=5e-2), (
        float(np.max(np.abs(out_np - ref))))
    print("KERNEL_OK")
</pallas_src>

<mosaic_0001>
module attributes {stable_mosaic.version = 11 : i64} {
  func.func @_global_pool_kernel(%arg0: memref<1x16xi32, #tpu.memory_space<vmem>>, %arg1: memref<16x128xf32, #tpu.memory_space<vmem>>, %arg2: memref<2x640xf32, #tpu.memory_space<vmem>>) attributes {dimension_semantics = [], scalar_prefetch = 0 : i64, scratch_operands = 0 : i64, tpu.core_type = #tpu.core_type<tc>} {
    %c0 = arith.constant 0 : index
    %c0_0 = arith.constant 0 : index
    %0 = vector.load %arg1[%c0, %c0_0] : memref<16x128xf32, #tpu.memory_space<vmem>>, vector<16x128xf32>
    %c0_1 = arith.constant 0 : index
    %c0_2 = arith.constant 0 : index
    %1 = vector.load %arg0[%c0_1, %c0_2] : memref<1x16xi32, #tpu.memory_space<vmem>>, vector<1x16xi32>
    %2 = tpu.iota {dimensions = array<i32: 0>} : vector<2x16xi32>
    %3 = vector.broadcast %1 : vector<1x16xi32> to vector<2x16xi32>
    %4 = arith.cmpi eq, %3, %2 : vector<2x16xi32>
    %5 = arith.extui %4 : vector<2x16xi1> to vector<2x16xi32>
    %6 = arith.sitofp %5 : vector<2x16xi32> to vector<2x16xf32>
    %cst = arith.constant dense<0.000000e+00> : vector<2x128xf32>
    %7 = tpu.matmul %6, %0, %cst {dimension_numbers = #tpu.dot_dimension_numbers<[1], [0], [0], [1], [0, 0, 1, 1], [], []>} : vector<2x16xf32>, vector<16x128xf32>, vector<2x128xf32> -> vector<2x128xf32>
    %cst_3 = arith.constant dense<0.000000e+00> : vector<2xf32>
    %8 = vector.multi_reduction <add>, %6, %cst_3 [1] : vector<2x16xf32> to vector<2xf32>
    %9 = vector.shape_cast %8 : vector<2xf32> to vector<2x1xf32>
    %cst_4 = arith.constant 1.000000e+00 : f32
    %10 = vector.broadcast %cst_4 : f32 to vector<2x1xf32>
    %11 = arith.maximumf %9, %10 : vector<2x1xf32>
    %12 = vector.broadcast %11 : vector<2x1xf32> to vector<2x128xf32>
    %13 = arith.divf %7, %12 : vector<2x128xf32>
    %14 = tpu.iota {dimensions = array<i32: 1>} : vector<1x128xi32>
    %c127_i32 = arith.constant 127 : i32
    %15 = vector.broadcast %c127_i32 : i32 to vector<1x128xi32>
    %16 = arith.cmpi eq, %14, %15 : vector<1x128xi32>
    %17 = arith.extui %16 : vector<1x128xi1> to vector<1x128xi32>
    %18 = arith.sitofp %17 : vector<1x128xi32> to vector<1x128xf32>
    %cst_5 = arith.constant dense<0.000000e+00> : vector<1x16xf32>
    %19 = tpu.matmul %18, %0, %cst_5 {dimension_numbers = #tpu.dot_dimension_numbers<[1], [1], [0], [0], [0, 0, 1, 0], [], []>} : vector<1x128xf32>, vector<16x128xf32>, vector<1x16xf32> -> vector<1x16xf32>
    %cst_6 = arith.constant -3.000000e+38 : f32
    %20 = vector.shape_cast %19 : vector<1x16xf32> to vector<1x16xf32>
    %21 = vector.broadcast %20 : vector<1x16xf32> to vector<2x16xf32>
    %22 = vector.broadcast %cst_6 : f32 to vector<2x16xf32>
    %23 = arith.select %4, %21, %22 : vector<2x16xi1>, vector<2x16xf32>
    %24 = tpu.iota {dimensions = array<i32: 1>} : vector<2x16xi32>
    %25 = arith.sitofp %24 : vector<2x16xi32> to vector<2x16xf32>
    %cst_7 = arith.constant dense<0xFF800000> : vector<2xf32>
    %26 = vector.multi_reduction <maximumf>, %23, %cst_7 [1] : vector<2x16xf32> to vector<2xf32>
    %27 = vector.shape_cast %26 : vector<2xf32> to vector<2x1xf32>
    %28 = vector.broadcast %27 : vector<2x1xf32> to vector<2x16xf32>
    %29 = arith.cmpf oge, %23, %28 : vector<2x16xf32>
    %cst_8 = arith.constant 1.600000e+01 : f32
    %30 = vector.broadcast %cst_8 : f32 to vector<2x16xf32>
    %31 = arith.select %29, %25, %30 : vector<2x16xi1>, vector<2x16xf32>
    %cst_9 = arith.constant dense<0x7F800000> : vector<2xf32>
    %32 = vector.multi_reduction <minimumf>, %31, %cst_9 [1] : vector<2x16xf32> to vector<2xf32>
    %33 = vector.shape_cast %32 : vector<2xf32> to vector<2x1xf32>
    %cst_10 = arith.constant 0.000000e+00 : f32
    %34 = vector.broadcast %cst_10 : f32 to vector<2x1xf32>
    %35 = arith.cmpf ogt, %9, %34 : vector<2x1xf32>
    %36 = vector.broadcast %33 : vector<2x1xf32> to vector<2x16xf32>
    %37 = arith.cmpf oeq, %25, %36 : vector<2x16xf32>
    %38 = vector.broadcast %35 : vector<2x1xi1> to vector<2x16xi1>
    %39 = arith.andi %37, %38 : vector<2x16xi1>
    %40 = arith.extui %39 : vector<2x16xi1> to vector<2x16xi32>
    %41 = arith.sitofp %40 : vector<2x16xi32> to vector<2x16xf32>
    %cst_11 = arith.constant dense<0.000000e+00> : vector<2x128xf32>
    %42 = tpu.matmul %41, %0, %cst_11 {dimension_numbers = #tpu.dot_dimension_numbers<[1], [0], [0], [1], [0, 0, 1, 1], [], []>} : vector<2x16xf32>, vector<16x128xf32>, vector<2x128xf32> -> vector<2x128xf32>
    %43 = vector.broadcast %33 : vector<2x1xf32> to vector<2x16xf32>
    %44 = arith.cmpf oeq, %25, %43 : vector<2x16xf32>
    %cst_12 = arith.constant -3.000000e+38 : f32
    %45 = vector.broadcast %cst_12 : f32 to vector<2x16xf32>
    %46 = arith.select %44, %45, %23 : vector<2x16xi1>, vector<2x16xf32>
    %cst_13 = arith.constant dense<0xFF800000> : vector<2xf32>
    %47 = vector.multi_reduction <maximumf>, %46, %cst_13 [1] : vector<2x16xf32> to vector<2xf32>
    %48 = vector.shape_cast %47 : vector<2xf32> to vector<2x1xf32>
    %49 = vector.broadcast %48 : vector<2x1xf32> to vector<2x16xf32>
    %50 = arith.cmpf oge, %46, %49 : vector<2x16xf32>
    %cst_14 = arith.constant 1.600000e+01 : f32
    %51 = vector.broadcast %cst_14 : f32 to vector<2x16xf32>
    %52 = arith.select %50, %25, %51 : vector<2x16xi1>, vector<2x16xf32>
    %cst_15 = arith.constant dense<0x7F800000> : vector<2xf32>
    %53 = vector.multi_reduction <minimumf>, %52, %cst_15 [1] : vector<2x16xf32> to vector<2xf32>
    %54 = vector.shape_cast %53 : vector<2xf32> to vector<2x1xf32>
    %cst_16 = arith.constant 1.000000e+00 : f32
    %55 = vector.broadcast %cst_16 : f32 to vector<2x1xf32>
    %56 = arith.cmpf ogt, %9, %55 : vector<2x1xf32>
    %57 = vector.broadcast %54 : vector<2x1xf32> to vector<2x16xf32>
    %58 = arith.cmpf oeq, %25, %57 : vector<2x16xf32>
    %59 = vector.broadcast %56 : vector<2x1xi1> to vector<2x16xi1>
    %60 = arith.andi %58, %59 : vector<2x16xi1>
    %61 = arith.extui %60 : vector<2x16xi1> to vector<2x16xi32>
    %62 = arith.sitofp %61 : vector<2x16xi32> to vector<2x16xf32>
    %cst_17 = arith.constant dense<0.000000e+00> : vector<2x128xf32>
    %63 = tpu.matmul %62, %0, %cst_17 {dimension_numbers = #tpu.dot_dimension_numbers<[1], [0], [0], [1], [0, 0, 1, 1], [], []>} : vector<2x16xf32>, vector<16x128xf32>, vector<2x128xf32> -> vector<2x128xf32>
    %64 = vector.broadcast %54 : vector<2x1xf32> to vector<2x16xf32>
    %65 = arith.cmpf oeq, %25, %64 : vector<2x16xf32>
    %cst_18 = arith.constant -3.000000e+38 : f32
    %66 = vector.broadcast %cst_18 : f32 to vector<2x16xf32>
    %67 = arith.select %65, %66, %46 : vector<2x16xi1>, vector<2x16xf32>
    %cst_19 = arith.constant dense<0xFF800000> : vector<2xf32>
    %68 = vector.multi_reduction <maximumf>, %67, %cst_19 [1] : vector<2x16xf32> to vector<2xf32>
    %69 = vector.shape_cast %68 : vector<2xf32> to vector<2x1xf32>
    %70 = vector.broadcast %69 : vector<2x1xf32> to vector<2x16xf32>
    %71 = arith.cmpf oge, %67, %70 : vector<2x16xf32>
    %cst_20 = arith.constant 1.600000e+01 : f32
    %72 = vector.broadcast %cst_20 : f32 to vector<2x16xf32>
    %73 = arith.select %71, %25, %72 : vector<2x16xi1>, vector<2x16xf32>
    %cst_21 = arith.constant dense<0x7F800000> : vector<2xf32>
    %74 = vector.multi_reduction <minimumf>, %73, %cst_21 [1] : vector<2x16xf32> to vector<2xf32>
    %75 = vector.shape_cast %74 : vector<2xf32> to vector<2x1xf32>
    %cst_22 = arith.constant 2.000000e+00 : f32
    %76 = vector.broadcast %cst_22 : f32 to vector<2x1xf32>
    %77 = arith.cmpf ogt, %9, %76 : vector<2x1xf32>
    %78 = vector.broadcast %75 : vector<2x1xf32> to vector<2x16xf32>
    %79 = arith.cmpf oeq, %25, %78 : vector<2x16xf32>
    %80 = vector.broadcast %77 : vector<2x1xi1> to vector<2x16xi1>
    %81 = arith.andi %79, %80 : vector<2x16xi1>
    %82 = arith.extui %81 : vector<2x16xi1> to vector<2x16xi32>
    %83 = arith.sitofp %82 : vector<2x16xi32> to vector<2x16xf32>
    %cst_23 = arith.constant dense<0.000000e+00> : vector<2x128xf32>
    %84 = tpu.matmul %83, %0, %cst_23 {dimension_numbers = #tpu.dot_dimension_numbers<[1], [0], [0], [1], [0, 0, 1, 1], [], []>} : vector<2x16xf32>, vector<16x128xf32>, vector<2x128xf32> -> vector<2x128xf32>
    %85 = tpu.concatenate %13, %7, %42, %63, %84 in 1 : vector<2x128xf32>, vector<2x128xf32>, vector<2x128xf32>, vector<2x128xf32>, vector<2x128xf32> -> vector<2x640xf32>
    %c0_24 = arith.constant 0 : index
    %c0_25 = arith.constant 0 : index
    %86 = vector.load %arg2[%c0_24, %c0_25] : memref<2x640xf32, #tpu.memory_space<vmem>>, vector<2x640xf32>
    tpu.vector_store %arg2[%c0_24, %c0_25], %85 {strides = array<i32>} : memref<2x640xf32, #tpu.memory_space<vmem>>, vector<2x640xf32>,
    return
  }
}

</mosaic_0001>

<bundles_post_ra>
// kernel: tpu_custom_call.1
= control target key start
LH: loop header
LB: loop body
LE: loop exit
PB: predicated region body
PF: predicated region fallthrough
CT: control target
= control target key end

     0   :  { %7 = vsyncpa [#allocation3], 0  ;;  %s769_s0 = inlined_call_operand.hbm [shape: s32[1,16], index: 0, kind: input, shape index: {}]   ;;  %s770_s1 = inlined_call_operand.hbm [shape: f32[16,128], index: 1, kind: input, shape index: {}]   ;;  %s771_s2 = inlined_call_operand.hbm [shape: f32[2,640], index: 2, kind: output, shape index: {}]  }
   0x1   :  { %8 = vsyncpa [#allocation6], 0 }
   0x2   :  { %9 = vsyncpa [#allocation4], 0  ;;  %s666_s9 = smov [#allocation2]   ;;  %s667_s11 = smov [#allocation5]  }
   0x3   :  { %s16_s10 = sshll.u32 %s666_s9, 4  ;;  %s25_s12 = sshll.u32 %s667_s11, 4  ;;  %s17_s10 = int_to_ptr.vmem [resolvable:$true] %s16_s10  ;;  %s26_s12 = int_to_ptr.vmem [resolvable:$true] %s25_s12 }
   0x4   :  { %s608_s13 = scalar_lea.vmem %s17_s10, 16  ;;  %s612_s14 = scalar_lea.vmem %s17_s10, 32 }
   0x5   :  { %p609_p0 = scmp.ne.s32.totalorder %s17_s10, %s608_s13  ;;  %p613_p1 = scmp.lt.s32.totalorder %s17_s10, %s17_s10 }
   0x6   :  { %p614_p2 = scmp.lt.s32.totalorder %s612_s14, %s608_s13 }
   0x8   :  { %p615_p3 = por %p614_p2, %p613_p1 }
   0xa   :  { %p616_p4 = pnand %p615_p3, %p609_p0 }
   0xc   :  { %619 = shalt.err (!%p616_p4)
}
   0xd   :  { %19 = dma.hbm_to_vmem [thread:$0]  %s769_s0, 16, %s17_s10, [#allocation3]  }
   0xe   :  { %s628_s17 = scalar_lea.vmem %s26_s12, 256  ;;  %p633_p6 = scmp.lt.s32.totalorder %s26_s12, %s26_s12 }
   0xf   :  { %p629_p5 = scmp.ne.s32.totalorder %s26_s12, %s628_s17  ;;  %p634_p7 = scmp.lt.s32.totalorder %s628_s17, %s628_s17 }
  0x11   :  { %p635_p8 = por %p634_p7, %p633_p6 }
  0x13   :  { %p636_p9 = pnand %p635_p8, %p629_p5 }
  0x15   :  { %639 = shalt.err (!%p636_p9)
}
  0x16   :  { %s668_s18 = smov 128   ;;  %s669_s19 = smov 8  }
  0x17   :  { %31 = dma.hbm_to_vmem [thread:$0]  %s770_s1, 256, %s26_s12, [#allocation6], %s668_s18, %s668_s18, %s669_s19  }
  0x18   :  { %660 = dma.done.wait [#allocation3], 16  }
  0x19   :  { %661 = vsyncadd [#allocation3], 4294967280 }
  0x1a   :  { %662 = dma.done.wait [#allocation6], 256  }
  0x1b   :  { %663 = vsyncadd [#allocation6], 4294967040  ;;  %v670_v0 = vmov 0.0   ;;  %vm671_vm0 = vmmov 0   ;;  %v41_v1 = vlaneseq  ;;  %v702_v2 = vld [vmem:[#allocation5 + $0x8] sm:$0xff]  ;;  %v707_v4 = vld [vmem:[#allocation5] sm:$0xff] }
  0x1c   :  { %561 = vmatprep.subr.mxu1 %v670_v0  ;;  %565 = vmatprep.mubr.msk.f32.mxu1 %vm671_vm0, %v670_v0  ;;  %v672_v5 = vmov 1.0   ;;  %v527_v8 = vld [vmem:[#allocation2] ss:$0 sm:$0xff]  ;;  %vm124_vm3 = vcmask 123904   ;;  %vm50_vm7 = vcmask 130048   ;;  %s674_s0 = smov [#allocation7]  }
  0x1d   :  { %554 = vmatprep.subr.mxu0 %v670_v0  ;;  %558 = vmatprep.mubr.msk.f32.mxu0 %vm671_vm0, %v670_v0  ;;  %v132_v3 = vand.u32 127, %v41_v1  ;;  %v719_v6 = vshrl.u32 %v41_v1, 7  ;;  %v673_v38 = vmov 1983009808   ;;  %s517_s1 = sshll.u32 %s674_s0, 4  ;;  %s518_s1 = int_to_ptr.vmem [resolvable:$true] %s517_s1 }
  0x1e   :  { %562 = vmatpush3.xpose.msra.mxu1 %v702_v2  ;;  %555 = vmatpush3.msra.mxu0 %v702_v2  ;;  %v486_v39 = vunpack.c.l.s4 %v673_v38  ;;  %s640_s22 = scalar_lea.vmem %s518_s1, 160  ;;  %p645_p11 = scmp.lt.s32.totalorder %s518_s1, %s518_s1 }
  0x1f   :  { %563 = vmatprep.subr.mxu1 %v670_v0  ;;  %556 = vmatprep.subr.mxu0 %v670_v0  ;;  %vm133_vm1 = vcmp.eq.s32.totalorder %v132_v3, 127  ;;  %v208_v7 = vsub.s32 0, %v719_v6  ;;  %vm47_vm2 = vcmp.eq.s32.totalorder %v527_v8, %v719_v6  ;;  %v726_v14 = vcvt.s32.f32 %v132_v3  ;;  %p641_p10 = scmp.ne.s32.totalorder %s518_s1, %s640_s22  ;;  %p646_p12 = scmp.lt.s32.totalorder %s640_s22, %s640_s22 }
  0x20   :  { %557 = vmatpush3.msra.mxu0 %v707_v4  ;;  %v528_v23 = vsel %vm47_vm2, 1.0, %v670_v0  ;;  %v487_v42 = vunpack.c.0.s8 %v486_v39 }
  0x21   :  { %568 = vmatprep.subr.mxu0 %v670_v0  ;;  %v125_v25 = vsel %vm124_vm3, %v528_v23, 0.0  ;;  %559 = vmatmul.mubr.msk.f32.vlgmr.msra.gmra.mxu0 %vm50_vm7, %v528_v23  ;;  %p647_p13 = por %p646_p12, %p645_p11 }
  0x22   :  { %564 = vmatpush3.xpose.msra.mxu1 %v707_v4  ;;  %569 = vmatpush3.msra.mxu0 %v702_v2  ;;  %v490_v45 = vsub.s32 %v487_v42, %v719_v6 }
  0x23   :  { %582 = vmatprep.subr.mxu1 %v670_v0  ;;  %572 = vmatprep.mubr.msk.f32.mxu0 %vm671_vm0, %v670_v0  ;;  %p648_p0 = pnand %p647_p13, %p641_p10 }
  0x24   :  { %570 = vmatprep.subr.mxu0 %v670_v0 }
  0x25   :  { %566 = vmatmul.mubr.msk.f32.vlgmr.msra.gmra.mxu1 %vm133_vm1, %v672_v5  ;;  %571 = vmatpush3.msra.mxu0 %v707_v4 }
  0x26   :  { %583 = vmatpush3.msra.mxu1 %v702_v2  ;;  %586 = vmatprep.mubr.msk.f32.mxu1 %vm671_vm0, %v670_v0 }
  0x27   :  { %584 = vmatprep.subr.mxu1 %v670_v0  ;;  %575 = vmatprep.subr.mxu0 %v670_v0 }
  0x28   :  { %585 = vmatpush3.msra.mxu1 %v707_v4 }
  0xe1   :  { %v120_v32 = vpop.f32.mrf.mxu0 }
  0xe3   :  { %v560_v33 = vpop.f32.mrf.mxu0 }
  0xe5   :  { %v202_v9 = vpop.f32.mrf.mxu1 }
  0xe6   :  { %v209_v10 = vrot.slane %v202_v9, %v208_v7 }
  0xe7   :  { %v567_v11 = vpop.f32.mrf.mxu1 }
  0xe8   :  { %v210_v12 = vsel %vm47_vm2, %v209_v10, -3e+38 }
  0xe9   :  { %v212_v13 = vsel %vm124_vm3, %v210_v12, -inf }
  0xea   :  { %213 = vmax.xlane.f32.xlu0 %v212_v13 }
 0x173   :  { %v214_v15 = vpop.xlane.xlu0 %213 }
 0x174   :  { %vm215_vm4 = vcmp.ge.f32.partialorder %v210_v12, %v214_v15 }
 0x175   :  { %v216_v16 = vsel %vm215_vm4, %v726_v14, 16.0 }
 0x176   :  { %v217_v17 = vsel %vm124_vm3, %v216_v16, inf }
 0x177   :  { %218 = vmin.xlane.f32.xlu0 %v217_v17 }
 0x200   :  { %v219_v18 = vpop.xlane.xlu0 %218 }
 0x201   :  { %vm221_vm5 = vcmp.eq.f32.partialorder %v726_v14, %v219_v18 }
 0x202   :  { %v300_v19 = vsel %vm221_vm5, -3e+38, %v210_v12 }
 0x203   :  { %v301_v20 = vsel %vm124_vm3, %v300_v19, -inf }
 0x204   :  { %302 = vmax.xlane.f32.xlu1 %v301_v20 }
 0x28d   :  { %v303_v21 = vpop.xlane.xlu1 %302 }
 0x28e   :  { %vm304_vm6 = vcmp.ge.f32.partialorder %v300_v19, %v303_v21 }
 0x28f   :  { %v305_v22 = vsel %vm304_vm6, %v726_v14, 16.0 }
 0x290   :  { %v306_v24 = vsel %vm124_vm3, %v305_v22, inf }
 0x291   :  { %307 = vmin.xlane.f32.xlu1 %v306_v24 }
 0x295   :  { %126 = vadd.xlane.f32.xlu1 %v125_v25 }
 0x31a   :  { %v308_v26 = vpop.xlane.xlu1 %307 }
 0x31b   :  { %vm310_vm8 = vcmp.eq.f32.partialorder %v726_v14, %v308_v26 }
 0x31c   :  { %v389_v27 = vsel %vm310_vm8, -3e+38, %v300_v19 }
 0x31d   :  { %v390_v28 = vsel %vm124_vm3, %v389_v27, -inf }
 0x31e   :  { %391 = vmax.xlane.f32.xlu0 %v390_v28  ;;  %v127_v29 = vpop.xlane.xlu1 %126 }
 0x31f   :  { %vm220_vm9 = vcmp.gt.f32.partialorder %v127_v29, 0.0  ;;  %vm309_vm10 = vcmp.gt.f32.partialorder %v127_v29, 1.0  ;;  %v128_v37 = vmax.f32 %v127_v29, 1.0  ;;  %vm398_vm14 = vcmp.gt.f32.partialorder %v127_v29, 2.0 }
 0x320   :  { %vm224_vm11 = vmand %vm221_vm5, %vm220_vm9 }
 0x321   :  { %v532_v30 = vsel %vm224_vm11, 1.0, %v670_v0  ;;  %vm313_vm12 = vmand %vm310_vm8, %vm309_vm10  ;;  %598 = vrcp.f32 %v128_v37 }
 0x322   :  { %573 = vmatmul.mubr.msk.f32.vlgmr.msra.gmra.mxu0 %vm50_vm7, %v532_v30  ;;  %v534_v31 = vsel %vm313_vm12, 1.0, %v670_v0 }
 0x323   :  { %576 = vmatpush3.msra.mxu0 %v702_v2  ;;  %579 = vmatprep.mubr.msk.f32.mxu0 %vm671_vm0, %v670_v0 }
 0x324   :  { %577 = vmatprep.subr.mxu0 %v670_v0 }
 0x325   :  { %578 = vmatpush3.msra.mxu0 %v707_v4 }
 0x326   :  { %580 = vmatmul.mubr.msk.f32.vlgmr.msra.gmra.mxu0 %vm50_vm7, %v534_v31 }
 0x32e   :  { %v599_v40 = vpop.eup %598 }
 0x32f   :  { %v130_v41 = vmul.f32 %v599_v40, %v120_v32 }
 0x331   :  { %v483_v44 = vcombine.low %v130_v41, %v120_v32 }
 0x333   :  { %v491_v48 = vrot.slane %v483_v44, %v490_v45 }
 0x3a7   :  { %v392_v34 = vpop.xlane.xlu0 %391 }
 0x3a8   :  { %vm393_vm13 = vcmp.ge.f32.partialorder %v389_v27, %v392_v34 }
 0x3a9   :  { %v394_v35 = vsel %vm393_vm13, %v726_v14, 16.0 }
 0x3aa   :  { %v395_v36 = vsel %vm124_vm3, %v394_v35, inf }
 0x3ab   :  { %396 = vmin.xlane.f32.xlu0 %v395_v36 }
 0x3e2   :  { %v296_v43 = vpop.f32.mrf.mxu0 }
 0x3e4   :  { %v574_v46 = vpop.f32.mrf.mxu0 }
 0x3e6   :  { %v385_v47 = vpop.f32.mrf.mxu0 }
 0x3e7   :  { %v484_v49 = vcombine.low %v296_v43, %v385_v47 }
 0x3e8   :  { %v581_v50 = vpop.f32.mrf.mxu0 }
 0x3e9   :  { %v498_v51 = vrot.slane %v484_v49, %v490_v45 }
 0x3eb   :  { %v499_v52 = vcombine.low %v491_v48, %v498_v51 }
 0x3ed   :  { %509 = vst [vmem:[#allocation7] sm:$0xff] %v499_v52 }
 0x434   :  { %v397_v53 = vpop.xlane.xlu0 %396 }
 0x435   :  { %vm399_vm15 = vcmp.eq.f32.partialorder %v726_v14, %v397_v53 }
 0x436   :  { %vm402_vm0 = vmand %vm399_vm15, %vm398_vm14 }
 0x437   :  { %v536_v54 = vsel %vm402_vm0, 1.0, %v670_v0 }
 0x438   :  { %587 = vmatmul.mubr.msk.f32.vlgmr.msra.gmra.mxu1 %vm50_vm7, %v536_v54 }
 0x4f8   :  { %v474_v55 = vpop.f32.mrf.mxu1 }
 0x4f9   :  { %538 = vst.sshfl [vmem:[#allocation7 + $0x8] sm:$0x3 pattern:$0x76325410] %v474_v55 }
 0x4fa   :  { %v588_v56 = vpop.f32.mrf.mxu1 }
 0x4fb   :  { %651 = shalt.err (!%p648_p0)
}
 0x4fc   :  { %520 = dma.vmem_to_hbm [thread:$0]  %s518_s1, 160, %s771_s2, [#allocation4]  }
 0x4fd   :  { %664 = dma.done.wait [#allocation4], 160  }
 0x4fe   :  { %665 = vsyncadd [#allocation4], 4294967136 }
 0x4ff   :  { %524 = vsyncpa [#allocation3], 1 }
 0x500   :  { %525 = vsyncpa [#allocation6], 1 }
 0x501   :  { %526 = vsyncpa [#allocation4], 1 }

</bundles_post_ra>
